<compile_context>
chip_gen: v6e
topology: v6e:2x2x1
jax: 0.10.0
libtpu: 0.0.40
codegen_flags: <defaults>
</compile_context>

<pallas_src>
import jax
import jax.numpy as jnp
from jax.experimental import pallas as pl
from jax.experimental.pallas import tpu as pltpu


def resizer_kernel(x_ref, w_ref, b_ref, g_ref, beta_ref, o_ref):
    """Fused Linear(H->D) + bias + LayerNorm(D, eps=1e-12) over one row tile.

    x_ref:    (tile_rows, H)  -- activations (native dtype, fed to MXU as-is)
    w_ref:    (H, D)          -- fc.weight.T
    b_ref:    (1, D)          -- fc.bias
    g_ref:    (1, D)          -- layer_norm.weight
    beta_ref: (1, D)          -- layer_norm.bias
    o_ref:    (tile_rows, D)
    """
    # MXU matmul with f32 accumulation; no pre-cast of operands.
    y = jnp.dot(x_ref[...], w_ref[...], preferred_element_type=jnp.float32)
    y = y + b_ref[...].astype(jnp.float32)
    # LayerNorm over last dim (biased variance, eps=1e-12, all math in f32).
    mu = jnp.mean(y, axis=-1, keepdims=True)
    var = jnp.mean((y - mu) ** 2, axis=-1, keepdims=True)
    y_hat = (y - mu) * jax.lax.rsqrt(var + 1e-12)
    o_ref[...] = (
        y_hat * g_ref[...].astype(jnp.float32) + beta_ref[...].astype(jnp.float32)
    ).astype(o_ref.dtype)
    # NOTE: nn.Dropout(0.1) is identity in eval mode; intentionally omitted.


def _round_up(x, m):
    return ((x + m - 1) // m) * m


def _pick_tile_rows(rows, H, D, x_itemsize, o_itemsize,
                    vmem_budget_bytes=20 * 1024 * 1024):
    """Largest MXU-aligned row tile fitting a double-buffered VMEM budget."""
    rows8 = _round_up(max(rows, 8), 8)
    # Constant blocks (weight + 3 vectors) are double-buffered by default;
    # account for the 2x rather than relying on pl.Buffered(1).
    const_bytes = 2 * (H * D * x_itemsize + 3 * D * 4)
    tile = 8
    for cand in (1024, 512, 256, 128, 64, 32, 16, 8):
        if cand > rows8:
            continue
        act_bytes = 2 * cand * H * x_itemsize   # input tile, double-buffered
        out_bytes = 2 * cand * D * o_itemsize   # output tile, double-buffered
        if const_bytes + act_bytes + out_bytes <= vmem_budget_bytes:
            tile = cand
            break
    # Keep at least 2 grid steps when possible so the "parallel" grid axis can
    # actually shard across both TensorCores on v7x.
    while tile > 8 and rows8 // tile < 2:
        tile //= 2
    return tile


def feature_resizer(x2, w, b, gamma, beta, *, tile_rows=None):
    """x2: (rows, H) -> (rows, D) via fused Linear + LayerNorm kernel."""
    rows, H = x2.shape
    D = w.shape[1]
    if tile_rows is None:
        tile_rows = _pick_tile_rows(rows, H, D, x2.dtype.itemsize,
                                    x2.dtype.itemsize)

    padded_rows = _round_up(rows, tile_rows)
    if padded_rows != rows:
        # Rows are independent; pad rows are computed then sliced off.
        x2 = jnp.pad(x2, ((0, padded_rows - rows), (0, 0)))

    out = pl.pallas_call(
        resizer_kernel,
        out_shape=jax.ShapeDtypeStruct((padded_rows, D), x2.dtype),
        grid_spec=pltpu.PrefetchScalarGridSpec(
            num_scalar_prefetch=0,
            grid=(padded_rows // tile_rows,),
            in_specs=[
                pl.BlockSpec((tile_rows, H), lambda i: (i, 0)),  # activations
                pl.BlockSpec((H, D), lambda i: (0, 0)),          # fc.weight.T
                pl.BlockSpec((1, D), lambda i: (0, 0)),          # fc.bias
                pl.BlockSpec((1, D), lambda i: (0, 0)),          # ln gamma
                pl.BlockSpec((1, D), lambda i: (0, 0)),          # ln beta
            ],
            out_specs=pl.BlockSpec((tile_rows, D), lambda i: (i, 0)),
        ),
        compiler_params=pltpu.CompilerParams(
            dimension_semantics=("parallel",),
        ),
    )(x2, w, b, gamma, beta)

    if padded_rows != rows:
        out = out[:rows]
    return out


def text_backbone_forward(last_hidden_state, attention_mask, params):
    """Mirrors TextBackbone.forward after the (external) text encoder.

    last_hidden_state: (B, S, H)  (what RobertaModel would return)
    attention_mask:    (B, S) int32
    """
    B, S, H = last_hidden_state.shape
    D = params["fc_w"].shape[1]

    # Run the row-independent resizer on the NATIVE (B*S, H) layout — avoids a
    # full HBM read+write transpose of the largest tensor.
    x2 = last_hidden_state.reshape(B * S, H)
    out2 = feature_resizer(
        x2, params["fc_w"], params["fc_b"], params["ln_g"], params["ln_b"]
    )

    # text_memory = last_hidden_state.transpose(0, 1) -> seq-first layout.
    # We apply that layout change to the D/H-times-smaller resized output.
    text_memory_resized = jnp.transpose(out2.reshape(B, S, D), (1, 0, 2))

    # text_attention_mask = attention_mask.ne(1) -> bool (B, S)   [glue]
    text_attention_mask = attention_mask != 1

    return {
        "text_attention_mask": text_attention_mask,
        "text_memory_resized": text_memory_resized,
    }


def _reference_resizer(text_memory, params):
    """Pure-JAX reference of FeatureResizer (eval mode), seq-first input."""
    y = text_memory @ params["fc_w"] + params["fc_b"][0]
    mu = jnp.mean(y, axis=-1, keepdims=True)
    var = jnp.mean((y - mu) ** 2, axis=-1, keepdims=True)
    y = (y - mu) / jnp.sqrt(var + 1e-12)
    return y * params["ln_g"][0] + params["ln_b"][0]


if __name__ == "__main__":
    # TODO(synk): the RobertaTokenizerFast / RobertaModel (pretrained HF text
    # encoder) cannot be expressed as a Pallas kernel; we synthesize its
    # output `last_hidden_state` deterministically instead.
    # Small but lane-dense demo shapes: hidden_size and d_model are multiples
    # of 128 so loads/stores are unmasked.
    B, S, H, D = 2, 8, 128, 128  # batch, seq (padded-longest), hidden, d_model

    key = jax.random.PRNGKey(0)
    k_h, k_w, k_b = jax.random.split(key, 3)

    # Synthetic encoder output + attention mask (last token of sample 1 padded).
    last_hidden_state = jax.random.normal(k_h, (B, S, H), dtype=jnp.float32)
    attention_mask = jnp.ones((B, S), dtype=jnp.int32).at[1, -1].set(0)

    # Deterministic FeatureResizer params (fc: H->D, LayerNorm(D)).
    bound = 1.0 / (H ** 0.5)
    params = {
        "fc_w": jax.random.uniform(k_w, (H, D), jnp.float32, -bound, bound),
        "fc_b": jax.random.uniform(k_b, (1, D), jnp.float32, -bound, bound),
        "ln_g": jnp.ones((1, D), jnp.float32),
        "ln_b": jnp.zeros((1, D), jnp.float32),
    }

    out = text_backbone_forward(last_hidden_state, attention_mask, params)
    jax.block_until_ready(out["text_memory_resized"])

    # Correctness check against pure-JAX reference (seq-first, like PyTorch).
    text_memory = jnp.transpose(last_hidden_state, (1, 0, 2))
    ref = _reference_resizer(text_memory, params)
    assert out["text_memory_resized"].shape == (S, B, D)
    assert out["text_attention_mask"].shape == (B, S)
    assert out["text_attention_mask"].dtype == jnp.bool_
    assert jnp.allclose(out["text_memory_resized"], ref, atol=1e-5, rtol=1e-5)

    print("KERNEL_OK")
</pallas_src>

<mosaic_0001>
module attributes {stable_mosaic.version = 11 : i64} {
  func.func @resizer_kernel(%arg0: i32, %arg1: memref<8x128xf32, #tpu.memory_space<vmem>>, %arg2: memref<128x128xf32, #tpu.memory_space<vmem>>, %arg3: memref<1x128xf32, #tpu.memory_space<vmem>>, %arg4: memref<1x128xf32, #tpu.memory_space<vmem>>, %arg5: memref<1x128xf32, #tpu.memory_space<vmem>>, %arg6: memref<8x128xf32, #tpu.memory_space<vmem>>) attributes {dimension_semantics = [#tpu.dimension_semantics<parallel>], iteration_bounds = array<i64: 2>, scalar_prefetch = 0 : i64, scratch_operands = 0 : i64, tpu.core_type = #tpu.core_type<tc>, window_params = [{transform_indices = @transform_0, window_bounds = array<i64: 8, 128>}, {pipeline_mode = #tpu.pipeline_mode<synchronous>, transform_indices = @transform_1, window_bounds = array<i64: 128, 128>}, {pipeline_mode = #tpu.pipeline_mode<synchronous>, transform_indices = @transform_2, window_bounds = array<i64: 1, 128>}, {pipeline_mode = #tpu.pipeline_mode<synchronous>, transform_indices = @transform_3, window_bounds = array<i64: 1, 128>}, {pipeline_mode = #tpu.pipeline_mode<synchronous>, transform_indices = @transform_4, window_bounds = array<i64: 1, 128>}, {transform_indices = @transform_5, window_bounds = array<i64: 8, 128>}]} {
    %c0 = arith.constant 0 : index
    %c0_0 = arith.constant 0 : index
    %0 = vector.load %arg1[%c0, %c0_0] : memref<8x128xf32, #tpu.memory_space<vmem>>, vector<8x128xf32>
    %c0_1 = arith.constant 0 : index
    %c0_2 = arith.constant 0 : index
    %1 = vector.load %arg2[%c0_1, %c0_2] : memref<128x128xf32, #tpu.memory_space<vmem>>, vector<128x128xf32>
    %cst = arith.constant dense<0.000000e+00> : vector<8x128xf32>
    %2 = tpu.matmul %0, %1, %cst {dimension_numbers = #tpu.dot_dimension_numbers<[1], [0], [0], [1], [0, 0, 1, 1], [], []>} : vector<8x128xf32>, vector<128x128xf32>, vector<8x128xf32> -> vector<8x128xf32>
    %c0_3 = arith.constant 0 : index
    %c0_4 = arith.constant 0 : index
    %3 = vector.load %arg3[%c0_3, %c0_4] : memref<1x128xf32, #tpu.memory_space<vmem>>, vector<1x128xf32>
    %4 = vector.broadcast %3 : vector<1x128xf32> to vector<8x128xf32>
    %5 = arith.addf %2, %4 : vector<8x128xf32>
    %cst_5 = arith.constant dense<0.000000e+00> : vector<8xf32>
    %6 = vector.multi_reduction <add>, %5, %cst_5 [1] : vector<8x128xf32> to vector<8xf32>
    %7 = vector.shape_cast %6 : vector<8xf32> to vector<8x1xf32>
    %cst_6 = arith.constant 1.280000e+02 : f32
    %8 = vector.broadcast %cst_6 : f32 to vector<8x1xf32>
    %9 = arith.divf %7, %8 : vector<8x1xf32>
    %10 = vector.broadcast %9 : vector<8x1xf32> to vector<8x128xf32>
    %11 = arith.subf %5, %10 : vector<8x128xf32>
    %12 = arith.mulf %11, %11 : vector<8x128xf32>
    %cst_7 = arith.constant dense<0.000000e+00> : vector<8xf32>
    %13 = vector.multi_reduction <add>, %12, %cst_7 [1] : vector<8x128xf32> to vector<8xf32>
    %14 = vector.shape_cast %13 : vector<8xf32> to vector<8x1xf32>
    %cst_8 = arith.constant 1.280000e+02 : f32
    %15 = vector.broadcast %cst_8 : f32 to vector<8x1xf32>
    %16 = arith.divf %14, %15 : vector<8x1xf32>
    %17 = vector.broadcast %9 : vector<8x1xf32> to vector<8x128xf32>
    %18 = arith.subf %5, %17 : vector<8x128xf32>
    %cst_9 = arith.constant 9.99999996E-13 : f32
    %19 = vector.broadcast %cst_9 : f32 to vector<8x1xf32>
    %20 = arith.addf %16, %19 : vector<8x1xf32>
    %21 = math.rsqrt %20 : vector<8x1xf32>
    %22 = vector.broadcast %21 : vector<8x1xf32> to vector<8x128xf32>
    %23 = arith.mulf %18, %22 : vector<8x128xf32>
    %c0_10 = arith.constant 0 : index
    %c0_11 = arith.constant 0 : index
    %24 = vector.load %arg4[%c0_10, %c0_11] : memref<1x128xf32, #tpu.memory_space<vmem>>, vector<1x128xf32>
    %25 = vector.broadcast %24 : vector<1x128xf32> to vector<8x128xf32>
    %26 = arith.mulf %23, %25 : vector<8x128xf32>
    %c0_12 = arith.constant 0 : index
    %c0_13 = arith.constant 0 : index
    %27 = vector.load %arg5[%c0_12, %c0_13] : memref<1x128xf32, #tpu.memory_space<vmem>>, vector<1x128xf32>
    %28 = vector.broadcast %27 : vector<1x128xf32> to vector<8x128xf32>
    %29 = arith.addf %26, %28 : vector<8x128xf32>
    %c0_14 = arith.constant 0 : index
    %c0_15 = arith.constant 0 : index
    %30 = vector.load %arg6[%c0_14, %c0_15] : memref<8x128xf32, #tpu.memory_space<vmem>>, vector<8x128xf32>
    tpu.vector_store %arg6[%c0_14, %c0_15], %29 {strides = array<i32>} : memref<8x128xf32, #tpu.memory_space<vmem>>, vector<8x128xf32>,
    return
  }
  func.func @transform_0(%arg0: i32) -> (i32, i32) {
    %c0_i32 = arith.constant 0 : i32
    %c0_i32_0 = arith.constant 0 : i32
    return %arg0, %c0_i32 : i32, i32
  }
  func.func @transform_1(%arg0: i32) -> (i32, i32) {
    %c0_i32 = arith.constant 0 : i32
    %c0_i32_0 = arith.constant 0 : i32
    %c0_i32_1 = arith.constant 0 : i32
    return %c0_i32, %c0_i32_0 : i32, i32
  }
  func.func @transform_2(%arg0: i32) -> (i32, i32) {
    %c0_i32 = arith.constant 0 : i32
    %c0_i32_0 = arith.constant 0 : i32
    %c0_i32_1 = arith.constant 0 : i32
    return %c0_i32, %c0_i32_0 : i32, i32
  }
  func.func @transform_3(%arg0: i32) -> (i32, i32) {
    %c0_i32 = arith.constant 0 : i32
    %c0_i32_0 = arith.constant 0 : i32
    %c0_i32_1 = arith.constant 0 : i32
    return %c0_i32, %c0_i32_0 : i32, i32
  }
  func.func @transform_4(%arg0: i32) -> (i32, i32) {
    %c0_i32 = arith.constant 0 : i32
    %c0_i32_0 = arith.constant 0 : i32
    %c0_i32_1 = arith.constant 0 : i32
    return %c0_i32, %c0_i32_0 : i32, i32
  }
  func.func @transform_5(%arg0: i32) -> (i32, i32) {
    %c0_i32 = arith.constant 0 : i32
    %c0_i32_0 = arith.constant 0 : i32
    return %arg0, %c0_i32 : i32, i32
  }
}

</mosaic_0001>

<bundles_post_ra>
// kernel: tpu_custom_call.1
= control target key start
LH: loop header
LB: loop body
LE: loop exit
PB: predicated region body
PF: predicated region fallthrough
CT: control target
= control target key end

     0   :  { %10 = vsyncpa [#allocation3], 0  ;;  %s935_s0 = inlined_call_operand.hbm [shape: f32[16,128], index: 0, kind: input, shape index: {}]   ;;  %s936_s1 = inlined_call_operand.hbm [shape: f32[128,128], index: 1, kind: input, shape index: {}]   ;;  %s937_s2 = inlined_call_operand.vmem [shape: f32[1,128], index: 2, kind: input, shape index: {}]   ;;  %s938_s3 = inlined_call_operand.vmem [shape: f32[1,128], index: 3, kind: input, shape index: {}]   ;;  %s939_s4 = inlined_call_operand.vmem [shape: f32[1,128], index: 4, kind: input, shape index: {}]   ;;  %s940_s5 = inlined_call_operand.hbm [shape: f32[16,128], index: 5, kind: output, shape index: {}]  }
   0x1   :  { %12 = vsyncpa [#allocation3 + $0x1], 0 }
   0x2   :  { %13 = vsyncpa [#allocation6], 0 }
   0x3   :  { %14 = vsyncpa [#allocation4], 0 }
   0x4   :  { %16 = vsyncpa [#allocation4 + $0x1], 0  ;;  %s765_s18 = smov 0   ;;  %s767_s19 = smov 0  }
   0x5   :  { %s769_s20 = smov 0   ;;  %s771_s21 = smov 0  }
   0x6 LB: > { %s786_s22 = sadd.s32 4294967295, %s726_s21   ;;  %s472_s23 = sadd.s32 4294967294, %s726_s21   ;;  %s726_s21 = sphi %s771_s21, %s962_s21   ;;  %s722_s20 = sphi %s769_s20, %s961_s20   ;;  %s718_s19 = sphi %s767_s19, %s960_s19   ;;  %s714_s18 = sphi %s765_s18, %s959_s18  }
   0x7   : > { %p42_p0 = scmp.ne.s32.totalorder %s718_s19, %s714_s18  ;;  %p941_p1 = scmp.eq.s32.totalorder %s786_s22, 0 }
   0x8   : > { %p156_p3 = scmp.eq.s32.totalorder %s472_s23, 1  ;;  %p473_p5 = scmp.ge.s32.totalorder %s726_s21, 1 }
   0x9   : > { %p795_p4 = por %p941_p1, %p42_p0  ;;  %p163_p7 = scmp.lt.s32.totalorder %s726_s21, 3 }
   0xa   : > { %p800_p6 = por %p156_p3, %p42_p0  ;;  %s728_s27 = smov [#allocation5]  }
   0xb   : > { %s945_s24 = scalar_select %p795_p4, 1, 0 }
   0xc   : > { %s946_s25 = scalar_select %p800_p6, 1, 0 }
   0xd   : > { %p805_p8 = pnand %p473_p5, %p163_p7  ;;  %s175_s28 = sshll.u32 %s728_s27, 4  ;;  %s176_s28 = int_to_ptr.vmem [resolvable:$true] %s175_s28 }
   0xe   : > { %s819_s30 = sadd.s32 1, %s726_s21   ;;  %s29_s6 = sadd.s32 1, %s722_s20 }
   0xf   : > { %s947_s26 = scalar_select %p805_p8, 1, 0 }
  0x10   : > { %p549_p9 = pneg %p805_p8  ;;  %s26_s7 = ssub.s32 %s726_s21, %s819_s30 }
  0x11   : > { %s615_s8 = scalar_lea.vmem %s176_s28, 2048  ;;  %p623_p5 = scmp.lt.s32.totalorder %s176_s28, %s176_s28 }
  0x12   : > { %p814_p11 = pnand %p549_p9, %p941_p1  ;;  %p616_p13 = scmp.ne.s32.totalorder %s176_s28, %s615_s8 }
  0x13   : > { %p624_p7 = scmp.lt.s32.totalorder %s615_s8, %s615_s8 }
  0x14   : > { %p606_p12 = pneg %p814_p11 }
  0x15   : > { %p625_p10 = por %p624_p7, %p623_p5 }
  0x16   : > { %p618_p0 = pnand %p616_p13, %p606_p12 }
  0x18   : > { %p619_p3 = pneg %p618_p0 }
  0x1a   : > { %p626_p2 = pnand %p625_p10, %p619_p3 }
  0x1c   : > { %629 = shalt.err (!%p626_p2)
}
  0x1d   : > { %s729_s9 = smov 128   ;;  %s730_s10 = smov 8  }
  0x1e   : > { %552 = dma.hbm_to_vmem [thread:$0]  (!%p814_p11), %s936_s1, 2048, %s176_s28, [#allocation6], %s729_s9, %s729_s9, %s730_s10  }
  0x1f   : > { %p27_p9 = scmp.eq.s32.totalorder %s26_s7, 0  ;;  %p36_p12 = scmp.ne.s32.totalorder %s722_s20, %s718_s19 }
  0x20   : > { %p37_p10 = scmp.eq.s32.totalorder %s726_s21, 0  ;;  %p562_p2 = scmp.lt.s32.totalorder %s726_s21, 2 }
  0x21   : > { %s836_s13 = scalar_select %p27_p9, %s722_s20, %s29_s6  }
  0x22   : > { %p38_p13 = por %p37_p10, %p36_p12  ;;  %p949_p0 = scmp.eq.s32.totalorder %s786_s22, 1 }
  0x23   : > { %s198_s15 = sand.u32 1, %s722_s20   ;;  %s477_s16 = sshll.u32 %s726_s21, 7 }
  0x24   : > { %p840_p3 = por %p949_p0, %p36_p12  ;;  %s476_s17 = sshll.u32 %s198_s15, 3 }
  0x25   : > { %s849_s29 = scalar_lea.hbm %s935_s0, %s477_s16  ;;  %s202_s28 = scalar_lea.vmem [#allocation2], %s476_s17 }
  0x26   : > { %s950_s14 = scalar_select %p840_p3, 1, 0 }
  0x27   : > { %s209_s6 = sshll.u32 %s202_s28, 4  ;;  %p851_p11 = pnand %p562_p2, %p38_p13  ;;  %s210_s6 = int_to_ptr.vmem [resolvable:$true] %s209_s6 }
  0x28   : > { %s199_s8 = scalar_lea.sflag [#allocation3], %s198_s15  ;;  %s630_s9 = scalar_lea.hbm %s849_s29, 128 }
  0x29   : > { %p631_p5 = scmp.ne.s32.totalorder %s849_s29, %s630_s9  ;;  %p632_p7 = pneg %p851_p11 }
  0x2a   : > { %s635_s12 = scalar_lea.hbm %s935_s0, 256  ;;  %p636_p10 = scmp.lt.s32.totalorder %s849_s29, %s935_s0 }
  0x2b   : > { %p633_p9 = pnand %p632_p7, %p631_p5  ;;  %p637_p2 = scmp.lt.s32.totalorder %s635_s12, %s630_s9 }
  0x2d   : > { %p634_p12 = pneg %p633_p9  ;;  %p638_p13 = por %p637_p2, %p636_p10 }
  0x2f   : > { %p639_p0 = pnand %p638_p13, %p634_p12 }
  0x31   : > { %642 = shalt.err (!%p639_p0)
}
  0x32   : > { %s643_s23 = scalar_lea.vmem %s210_s6, 128  ;;  %s731_s15 = smov [#allocation2]  }
  0x33   : > { %p644_p1 = scmp.ne.s32.totalorder %s210_s6, %s643_s23  ;;  %s648_s27 = sshll.u32 %s731_s15, 4  ;;  %s649_s27 = int_to_ptr.vmem [resolvable:$false] %s648_s27 }
  0x34   : > { %s650_s28 = scalar_lea.vmem %s649_s27, 256  ;;  %p651_p5 = scmp.lt.s32.totalorder %s210_s6, %s649_s27 }
  0x35   : > { %p646_p6 = pnand %p644_p1, %p632_p7  ;;  %p652_p9 = scmp.lt.s32.totalorder %s650_s28, %s643_s23 }
  0x37   : > { %p647_p3 = pneg %p646_p6  ;;  %p653_p4 = por %p652_p9, %p651_p5 }
  0x39   : > { %p654_p8 = pnand %p653_p4, %p647_p3 }
  0x3b   : > { %657 = shalt.err (!%p654_p8)
}
  0x3c   : > { %556 = dma.hbm_to_vmem [thread:$0]  (!%p851_p11), %s849_s29, 128, %s210_s6, %s199_s8  }
  0x3d   : > { %p952_p12 = scmp.ne.s32.totalorder %s947_s26, 0 }
  0x3e   : > { %s872_s9 = sand.u32 (!%p952_p12), 1, %s718_s19   ;;  %p953_p1 = scmp.ne.s32.totalorder (!%p952_p12), %s945_s24, 0 }
  0x3f   : > { %218 = sbr.rel (%p952_p12) target bundleno = 619 (0x26b), region = 40  ;;  %s479_s10 = sshll.u32 (!%p952_p12), %s872_s9, 3 }
  0x40   : > { %s221_s11 = scalar_lea.sflag (!%p952_p12), [#allocation3], %s872_s9  ;;  %s878_s12 = scalar_lea.vmem (!%p952_p12), [#allocation2], %s479_s10 }
  0x44   : > { %701 = dma.done.wait (%p953_p1), %s221_s11, 128  }
  0x45   : > { %703 = vsyncadd (%p953_p1), %s221_s11, 4294967168  ;;  %p954_p4 = scmp.eq.s32.totalorder %s786_s22, 0 }
  0x47   : > { %705 = dma.done.wait (%p954_p4), [#allocation6], 2048   ;;  %p955_p6 = pmov %p954_p4 }
  0x48   : > { %v732_v0 = vmov 0.0   ;;  %vm733_vm0 = vmmov 0   ;;  %v271_v1 = vld [vmem:[#allocation5 + $0x78] sm:$0xff]  ;;  %v270_v2 = vld [vmem:[#allocation5 + $0x70] sm:$0xff]  ;;  %v269_v3 = vld [vmem:[#allocation5 + $0x68] sm:$0xff]  ;;  %s486_s16 = sshll.u32 %s786_s22, 7 }
  0x49   : > { %707 = vsyncadd (%p955_p6), [#allocation6], 4294965248  ;;  %506 = vmatprep.subr.mxu0 %v732_v0  ;;  %538 = vmatprep.mubr.msk.f32.mxu0 %vm733_vm0, %v732_v0  ;;  %v268_v4 = vld [vmem:[#allocation5 + $0x60] sm:$0xff]  ;;  %v267_v5 = vld [vmem:[#allocation5 + $0x58] sm:$0xff]  ;;  %s254_s17 = scalar_lea.vmem [#allocation7], %s479_s10  ;;  %s390_s28 = scalar_lea.hbm %s940_s5, %s486_s16 }
  0x4a   : > { %507 = vmatpush3.msra.mxu0 %v271_v1  ;;  %v266_v6 = vld [vmem:[#allocation5 + $0x50] sm:$0xff]  ;;  %v265_v7 = vld [vmem:[#allocation5 + $0x48] sm:$0xff]  ;;  %v264_v8 = vld [vmem:[#allocation5 + $0x40] sm:$0xff]  ;;  %s392_s23 = sshll.u32 %s254_s17, 4  ;;  %s379_s11 = scalar_lea.sflag [#allocation4], %s872_s9  ;;  %s393_s23 = int_to_ptr.vmem [resolvable:$true] %s392_s23 }
  0x4b   : > { %508 = vmatprep.subr.mxu0 %v732_v0  ;;  %v263_v9 = vld [vmem:[#allocation5 + $0x38] sm:$0xff]  ;;  %v262_v10 = vld [vmem:[#allocation5 + $0x30] sm:$0xff]  ;;  %v261_v11 = vld [vmem:[#allocation5 + $0x28] sm:$0xff]  ;;  %p956_p3 = scmp.ne.s32.totalorder %s950_s14, 0  ;;  %s734_s24 = smov [#allocation7]  }
  0x4c   : > { %509 = vmatpush3.msra.mxu0 %v270_v2  ;;  %v260_v12 = vld [vmem:[#allocation5 + $0x20] sm:$0xff]  ;;  %v259_v13 = vld [vmem:[#allocation5 + $0x18] sm:$0xff]  ;;  %v258_v14 = vld [vmem:[#allocation5 + $0x10] sm:$0xff]  ;;  %s662_s26 = sshll.u32 %s734_s24, 4  ;;  %s663_s26 = int_to_ptr.vmem [resolvable:$false] %s662_s26 }
  0x4d   : > { %510 = vmatprep.subr.mxu0 %v732_v0  ;;  %v257_v15 = vld [vmem:[#allocation5 + $0x8] sm:$0xff]  ;;  %v256_v16 = vld [vmem:[#allocation5] sm:$0xff]  ;;  %v255_v17 = vld [vmem:[%s878_s12] sm:$0xff]  ;;  %s658_s12 = scalar_lea.vmem %s393_s23, 128  ;;  %s664_s22 = scalar_lea.vmem %s663_s26, 256 }
  0x4e   : > { %511 = vmatpush3.msra.mxu0 %v269_v3  ;;  %v482_v18 = vld [vmem:[%s937_s2] ss:$0 sm:$0xff]  ;;  %p659_p8 = scmp.ne.s32.totalorder %s393_s23, %s658_s12  ;;  %p665_p10 = scmp.lt.s32.totalorder %s393_s23, %s663_s26 }
  0x4f   : > { %512 = vmatprep.subr.mxu0 %v732_v0  ;;  %v483_v30 = vld [vmem:[%s938_s3] ss:$0 sm:$0xff]  ;;  %p666_p2 = scmp.lt.s32.totalorder %s664_s22, %s658_s12 }
  0x50   : > { %513 = vmatpush3.msra.mxu0 %v268_v4  ;;  %v484_v32 = vld [vmem:[%s939_s4] ss:$0 sm:$0xff]  ;;  %p660_p11 = pnand %p659_p8, %p956_p3 }
  0x51   : > { %514 = vmatprep.subr.mxu0 %v732_v0  ;;  %p667_p13 = por %p666_p2, %p665_p10 }
  0x52   : > { %515 = vmatpush3.msra.mxu0 %v267_v5  ;;  %p661_p7 = pneg %p660_p11 }
  0x53   : > { %516 = vmatprep.subr.mxu0 %v732_v0 }
  0x54   : > { %517 = vmatpush3.msra.mxu0 %v266_v6  ;;  %p668_p0 = pnand %p667_p13, %p661_p7 }
  0x55   : > { %518 = vmatprep.subr.mxu0 %v732_v0 }
  0x56   : > { %519 = vmatpush3.msra.mxu0 %v265_v7 }
  0x57   : > { %520 = vmatprep.subr.mxu0 %v732_v0 }
  0x58   : > { %521 = vmatpush3.msra.mxu0 %v264_v8 }
  0x59   : > { %522 = vmatprep.subr.mxu0 %v732_v0 }
  0x5a   : > { %523 = vmatpush3.msra.mxu0 %v263_v9 }
  0x5b   : > { %524 = vmatprep.subr.mxu0 %v732_v0 }
  0x5c   : > { %525 = vmatpush3.msra.mxu0 %v262_v10 }
  0x5d   : > { %526 = vmatprep.subr.mxu0 %v732_v0 }
  0x5e   : > { %527 = vmatpush3.msra.mxu0 %v261_v11 }
  0x5f   : > { %528 = vmatprep.subr.mxu0 %v732_v0 }
  0x60   : > { %529 = vmatpush3.msra.mxu0 %v260_v12 }
  0x61   : > { %530 = vmatprep.subr.mxu0 %v732_v0 }
  0x62   : > { %531 = vmatpush3.msra.mxu0 %v259_v13 }
  0x63   : > { %532 = vmatprep.subr.mxu0 %v732_v0 }
  0x64   : > { %533 = vmatpush3.msra.mxu0 %v258_v14 }
  0x65   : > { %534 = vmatprep.subr.mxu0 %v732_v0 }
  0x66   : > { %535 = vmatpush3.msra.mxu0 %v257_v15 }
  0x67   : > { %536 = vmatprep.subr.mxu0 %v732_v0 }
  0x68   : > { %537 = vmatpush3.msra.mxu0 %v256_v16 }
  0x69   : > { %539 = vmatmul.mubr.f32.vlgmr.msra.gmra.mxu0 %v255_v17 }
 0x129   : > { %v345_v19 = vpop.f32.mrf.mxu0 }
 0x12a   : > { %v346_v20 = vadd.f32 %v482_v18, %v345_v19 }
 0x12b   : > { %v540_v21 = vpop.f32.mrf.mxu0 }
 0x12c   : > { %349 = vadd.xlane.f32.xlu0 %v346_v20 }
 0x1b5   : > { %v350_v22 = vpop.xlane.xlu0 %349 }
 0x1b6   : > { %v352_v23 = vmul.f32 0.0078125, %v350_v22 }
 0x1b8   : > { %v353_v24 = vsub.f32 %v346_v20, %v352_v23 }
 0x1ba   : > { %v354_v25 = vmul.f32 %v353_v24, %v353_v24 }
 0x1bc   : > { %355 = vadd.xlane.f32.xlu0 %v354_v25 }
 0x245   : > { %v356_v26 = vpop.xlane.xlu0 %355 }
 0x246   : > { %v357_v27 = vmul.f32 0.0078125, %v356_v26 }
 0x248   : > { %v358_v28 = vadd.f32 1e-12, %v357_v27 }
 0x24a   : > { %602 = vrsqrt.f32 %v358_v28 }
 0x257   : > { %v603_v29 = vpop.eup %602 }
 0x258   : > { %v360_v31 = vmul.f32 %v603_v29, %v353_v24 }
 0x25a   : > { %v368_v33 = vmul.f32 %v483_v30, %v360_v31 }
 0x25c   : > { %v376_v34 = vadd.f32 %v484_v32, %v368_v33 }
 0x25e   : > { %377 = vst [vmem:[%s254_s17] sm:$0xff] %v376_v34 }
 0x25f   : > { %671 = shalt.err (!%p668_p0)
}
 0x260   : > { %s672_s10 = scalar_lea.hbm %s390_s28, 128  ;;  %s676_s6 = scalar_lea.hbm %s940_s5, 256 }
 0x261   : > { %p673_p5 = scmp.ne.s32.totalorder %s390_s28, %s672_s10  ;;  %p677_p1 = scmp.lt.s32.totalorder %s390_s28, %s940_s5 }
 0x262   : > { %p678_p4 = scmp.lt.s32.totalorder %s676_s6, %s672_s10 }
 0x263   : > { %p674_p9 = pnand %p673_p5, %p956_p3 }
 0x264   : > { %p679_p6 = por %p678_p4, %p677_p1 }
 0x265   : > { %p675_p12 = pneg %p674_p9 }
 0x267   : > { %p680_p8 = pnand %p679_p6, %p675_p12 }
 0x269   : > { %683 = shalt.err (!%p680_p8)
}
 0x26a   : > { %547 = dma.vmem_to_hbm [thread:$0]  (%p956_p3), %s393_s23, 128, %s390_s28, %s379_s11  }
 0x26b PF: > { %s404_s16 = sand.u32 1, %s714_s18   ;;  %p957_p11 = scmp.ne.s32.totalorder %s946_s25, 0 }
 0x26c   : > { %p958_p7 = scmp.ge.s32.totalorder %s726_s21, 2  ;;  %s405_s17 = scalar_lea.sflag [#allocation4], %s404_s16 }
 0x26e   : > { %p558_p10 = pnand %p958_p7, %p957_p11 }
 0x270   : > { %p559_p2 = pneg %p558_p10 }
 0x272   : > { %709 = dma.done.wait (%p559_p2), %s405_s17, 128  }
 0x273   : > { %711 = vsyncadd (%p559_p2), %s405_s17, 4294967168  ;;  %p19_p13 = scmp.ge.s32.totalorder %s819_s30, 4   ;;  %s959_s18 = smov %s718_s19 }
 0x274   : > { %s960_s19 = smov %s722_s20  ;;  %s961_s20 = smov %s836_s13 }
 0x275   : > { %s962_s21 = smov %s819_s30  ;;  %21 = sbr.rel (!%p19_p13) target bundleno = 6 (0x6), region = 89 }
 0x27a   :  { %410 = vsyncpa [#allocation3], 1 }
 0x27b   :  { %412 = vsyncpa [#allocation3 + $0x1], 1 }
 0x27c   :  { %413 = vsyncpa [#allocation6], 1 }
 0x27d   :  { %414 = vsyncpa [#allocation4], 1 }
 0x27e   :  { %416 = vsyncpa [#allocation4 + $0x1], 1 }

</bundles_post_ra>
